<compile_context>
chip_gen: v5e
topology: v5e:2x2
jax: 0.10.0
libtpu: 0.0.40
codegen_flags: <defaults>
</compile_context>

<pallas_src>
import math

import jax
import jax.numpy as jnp
from jax.experimental import pallas as pl
from jax.experimental.pallas import tpu as pltpu


def _build_pe_table(d_model: int, max_len: int = 1000,
                    dtype=jnp.float32) -> jnp.ndarray:
    """Sinusoidal table, shape (max_len, d_model), already in the activation dtype."""
    position = jnp.arange(0, max_len, dtype=jnp.float32)[:, None]              # (L, 1)
    div_term = jnp.exp(jnp.arange(0, d_model, 2, dtype=jnp.float32)
                       * (-math.log(10000.0) / d_model))                        # (D/2,)
    angles = position * div_term                                                # (L, D/2)
    pe = jnp.zeros((max_len, d_model), dtype=jnp.float32)
    pe = pe.at[:, 0::2].set(jnp.sin(angles))
    pe = pe.at[:, 1::2].set(jnp.cos(angles))
    return pe.astype(dtype)   # cast once here, not on every forward call


def _pe_add_kernel(x_ref, pe_ref, o_ref):
    # x_ref / o_ref: (tS, b*D) lane-dense slab; pe_ref: (tS, D).
    d = pe_ref.shape[1]
    b = x_ref.shape[1] // d
    pe_tile = pe_ref[...]
    if b <= 64:
        # Unrolled static-slice add: no (tS, b*D) replicated temporary, no XLU
        # lane-shuffle work; each slice is a static ref view.
        for k in range(b):
            sl = slice(k * d, (k + 1) * d)
            o_ref[:, sl] = x_ref[:, sl] + pe_tile
    else:
        # Fallback for an untiled very wide row (lane tiling normally caps b).
        o_ref[...] = x_ref[...] + jnp.tile(pe_tile, (1, b))


def _sublane_multiple(itemsize: int) -> int:
    # f32 -> 8, bf16 -> 16, int8/fp8 -> 32 (native packed sublane tiles).
    return {4: 8, 2: 16, 1: 32}.get(itemsize, 8)


def _choose_lane_split(B: int, D: int, itemsize: int,
                       target_tile_bytes: int, sublane: int) -> int:
    """Number of lane-axis grid chunks (each = (B//n)*D lanes, multiple of 128)."""
    full_row_bytes = B * D * itemsize
    if full_row_bytes * sublane <= target_tile_bytes:
        return 1                                    # full-width rows fit the budget
    best = 1
    for n in range(2, B + 1):
        if B % n != 0:
            continue
        cB = B // n
        if (cB * D) % 128 != 0:                     # keep chunks lane-aligned/legal
            continue
        if cB * D * itemsize * sublane <= target_tile_bytes:
            return n                                # smallest split that fits
        best = n                                    # remember finest legal split
    return best


def positional_encoding_forward(x: jnp.ndarray, pe: jnp.ndarray,
                                *, target_tile_bytes: int = 4 * 1024 * 1024,
                                donate_x: bool = False) -> jnp.ndarray:
    """x: (seq_len, batch, d_model); pe: (max_len, d_model) or (max_len, 1, d_model)."""
    S, B, D = x.shape
    max_len = pe.shape[0]
    if S > max_len:
        raise ValueError(f"seq_len {S} exceeds positional-encoding max_len {max_len}")

    itemsize = x.dtype.itemsize
    sublane = _sublane_multiple(itemsize)

    # Lane-dense views: fold batch into the lane (last) axis.
    x2 = x.reshape(S, B * D)
    pe2 = pe.reshape(max_len, D)
    if pe2.dtype != x.dtype:        # normally a no-op: table is pre-cast once
        pe2 = pe2.astype(x.dtype)

    # ---- tiling -------------------------------------------------------------
    nB = _choose_lane_split(B, D, itemsize, target_tile_bytes, sublane)
    cB = B // nB
    cW = cB * D                                         # lane width per tile
    row_bytes = cW * itemsize

    rows = max(1, target_tile_bytes // row_bytes)
    tS = max(sublane, (rows // sublane) * sublane)
    if tS >= S:
        tS = S
    # Ensure >= 2 grid steps when the whole thing fits one tile, so the
    # "parallel" axis actually engages both v7x TensorCores.
    if tS == S and nB == 1 and S >= 2 * sublane:
        half = -(-S // 2)
        tS = ((half + sublane - 1) // sublane) * sublane

    pe_in = pe2
    if tS == S and S % 8 != 0:
        # Block leading dim must be a multiple of 8 or equal the full dim;
        # slice pe so the "full dim" rule holds for it too (tiny-S case only).
        pe_in = pe2[:S]

    grid = (pl.cdiv(S, tS), nB)

    # ---- VMEM budget / cost hint --------------------------------------------
    tile_bytes = tS * cW * itemsize
    pe_tile_bytes = tS * D * itemsize
    need = 4 * tile_bytes + 2 * pe_tile_bytes + (1 << 20)   # 2x(x)+2x(out)+2x(pe)+slack
    vmem_limit = int(min(max(need, 16 * 1024 * 1024), 48 * 1024 * 1024))

    cost = pl.CostEstimate(
        flops=S * B * D,
        transcendentals=0,
        bytes_accessed=(2 * S * B * D + S * D) * itemsize,
    )

    out2 = pl.pallas_call(
        _pe_add_kernel,
        out_shape=jax.ShapeDtypeStruct((S, B * D), x.dtype),
        grid=grid,
        in_specs=[
            pl.BlockSpec((tS, cW), lambda i, j: (i, j)),   # x slab
            pl.BlockSpec((tS, D), lambda i, j: (i, 0)),    # pe rows for this tile
        ],
        out_specs=pl.BlockSpec((tS, cW), lambda i, j: (i, j)),
        compiler_params=pltpu.CompilerParams(
            dimension_semantics=("parallel", "parallel"),  # megacore split on v7x
            vmem_limit_bytes=vmem_limit,
        ),
        cost_estimate=cost,
        # In-place update when the caller no longer needs x (pure HBM saving).
        input_output_aliases=({0: 0} if donate_x else {}),
    )(x2, pe_in)

    return out2.reshape(S, B, D)


if __name__ == "__main__":
    d_model = 32
    max_len = 1000
    seq_len = 8
    batch = 2

    # Table is built (and dtype-cast) once, outside the per-call hot path.
    pe_table = _build_pe_table(d_model, max_len, dtype=jnp.float32)

    key = jax.random.PRNGKey(0)
    x = jax.random.normal(key, (seq_len, batch, d_model), dtype=jnp.float32)

    out = positional_encoding_forward(x, pe_table)
    out = jax.block_until_ready(out)

    # Correctness check vs. plain-JAX reference of the PyTorch forward.
    ref = x + pe_table[:seq_len][:, None, :]
    assert out.shape == (seq_len, batch, d_model)
    assert jnp.allclose(out, ref, atol=1e-6, rtol=1e-6)

    print("KERNEL_OK")
</pallas_src>

<mosaic_0001>
module attributes {stable_mosaic.version = 11 : i64} {
  func.func @_pe_add_kernel(%arg0: i32, %arg1: i32, %arg2: memref<8x64xf32, #tpu.memory_space<vmem>>, %arg3: memref<8x32xf32, #tpu.memory_space<vmem>>, %arg4: memref<8x64xf32, #tpu.memory_space<vmem>>) attributes {dimension_semantics = [#tpu.dimension_semantics<parallel>, #tpu.dimension_semantics<parallel>], iteration_bounds = array<i64: 1, 1>, scalar_prefetch = 0 : i64, scratch_operands = 0 : i64, tpu.core_type = #tpu.core_type<tc>, window_params = [{transform_indices = @transform_0, window_bounds = array<i64: 8, 64>}, {transform_indices = @transform_1, window_bounds = array<i64: 8, 32>}, {transform_indices = @transform_2, window_bounds = array<i64: 8, 64>}]} {
    %c0 = arith.constant 0 : index
    %c0_0 = arith.constant 0 : index
    %0 = vector.load %arg3[%c0, %c0_0] : memref<8x32xf32, #tpu.memory_space<vmem>>, vector<8x32xf32>
    %c0_1 = arith.constant 0 : index
    %c0_2 = arith.constant 0 : index
    %1 = vector.load %arg2[%c0_1, %c0_2] : memref<8x64xf32, #tpu.memory_space<vmem>>, vector<8x32xf32>
    %2 = arith.addf %1, %0 : vector<8x32xf32>
    %c0_3 = arith.constant 0 : index
    %c0_4 = arith.constant 0 : index
    %3 = vector.load %arg4[%c0_3, %c0_4] : memref<8x64xf32, #tpu.memory_space<vmem>>, vector<8x32xf32>
    tpu.vector_store %arg4[%c0_3, %c0_4], %2 {strides = array<i32>} : memref<8x64xf32, #tpu.memory_space<vmem>>, vector<8x32xf32>,
    %c0_5 = arith.constant 0 : index
    %c32 = arith.constant 32 : index
    %4 = vector.load %arg2[%c0_5, %c32] : memref<8x64xf32, #tpu.memory_space<vmem>>, vector<8x32xf32>
    %5 = arith.addf %4, %0 : vector<8x32xf32>
    %c0_6 = arith.constant 0 : index
    %c32_7 = arith.constant 32 : index
    %6 = vector.load %arg4[%c0_6, %c32_7] : memref<8x64xf32, #tpu.memory_space<vmem>>, vector<8x32xf32>
    tpu.vector_store %arg4[%c0_6, %c32_7], %5 {strides = array<i32>} : memref<8x64xf32, #tpu.memory_space<vmem>>, vector<8x32xf32>,
    return
  }
  func.func @transform_0(%arg0: i32, %arg1: i32) -> (i32, i32) {
    %c0_i32 = arith.constant 0 : i32
    return %arg0, %arg1 : i32, i32
  }
  func.func @transform_1(%arg0: i32, %arg1: i32) -> (i32, i32) {
    %c0_i32 = arith.constant 0 : i32
    %c0_i32_0 = arith.constant 0 : i32
    return %arg0, %c0_i32 : i32, i32
  }
  func.func @transform_2(%arg0: i32, %arg1: i32) -> (i32, i32) {
    %c0_i32 = arith.constant 0 : i32
    return %arg0, %arg1 : i32, i32
  }
}

</mosaic_0001>

<bundles_post_ra>
// kernel: tpu_custom_call.1
= control target key start
LH: loop header
LB: loop body
LE: loop exit
PB: predicated region body
PF: predicated region fallthrough
CT: control target
= control target key end

     0   :  { %vm15_vm0 = vcmask 261120   ;;  %s95_s0 = inlined_call_operand.vmem [shape: f32[8,64], index: 0, kind: input, shape index: {}]   ;;  %s96_s1 = inlined_call_operand.vmem [shape: f32[1000,32], index: 1, kind: input, shape index: {}]   ;;  %s97_s2 = inlined_call_operand.hbm [shape: f32[8,64], index: 2, kind: output, shape index: {}]  }
   0x1   :  { %v12_v0 = vld [vmem:[%s96_s1] sm:$0xff] }
   0x2   :  { %v13_v1 = vld [vmem:[%s95_s0] sm:$0xff] }
   0x3   :  { %7 = vsyncpa [#allocation3], 0  ;;  %v14_v2 = vadd.f32 %v13_v1, %v12_v0  ;;  %s69_s13 = smov 32   ;;  %s70_s14 = smov [#allocation2]   ;;  %vm23_vm1 = vcmask 523520  }
   0x4   :  { %19 = vrot.lane.b32.xlu0 %v12_v0, %s69_s13  ;;  %s30_s15 = sshll.u32 %s70_s14, 4  ;;  %s32_s18 = sshll.u32 %s97_s2, 4  ;;  %s31_s15 = int_to_ptr.vmem [resolvable:$true] %s30_s15  ;;  %s33_s18 = int_to_ptr.hbm [resolvable:$true] %s32_s18 }
   0x5   :  { %16 = vst.msk [vmem:[#allocation2] sm:$0xff] %vm15_vm0, %v14_v2 }
  0x76   :  { %v20_v3 = vpop.permute.xlu0 %19 }
  0x77   :  { %v22_v4 = vadd.f32 %v20_v3, %v13_v1 }
  0x79   :  { %24 = vst.msk [vmem:[#allocation2] sm:$0xff] %vm23_vm1, %v22_v4 }
  0x7a   :  { %35 = dma.vmem_to_hbm [thread:$0]  %s31_s15, 128, %s33_s18, [#allocation3]  }
  0x7b   :  { %67 = dma.done.wait [#allocation3], 128  }
  0x7c   :  { %68 = vsyncadd [#allocation3], 4294967168 }
  0x7d   :  { %40 = vsyncpa [#allocation3], 1 }

</bundles_post_ra>
